<compile_context>
chip_gen: v5e
topology: v5e:2x2
jax: 0.10.0
libtpu: 0.0.40
codegen_flags: <defaults>
</compile_context>

<pallas_src>
import functools

import jax
import jax.numpy as jnp
from jax.experimental import pallas as pl
from jax.experimental.pallas import tpu as pltpu

_HALF_LOG_2PI = 0.9189385332046727  # 0.5 * log(2*pi)
_LANES = 128
_SHIFT = 6.0                        # lgamma upward-shift (2 groups of 3 factors)


def _p_lo(x):
    return x * (x + 1.0) * (x + 2.0)


def _p_hi(x):
    return (x + 3.0) * (x + 4.0) * (x + 5.0)


def _stirling_tail(z):
    # 3-term Stirling correction, abs error < 1e-8 for z >= 6.  The approx
    # reciprocal only feeds this small correction, so its ~2^-12 relative
    # error is harmless.
    zi = pl.reciprocal(z, approx=True)
    zi2 = zi * zi
    return zi * (1.0 / 12.0 + zi2 * (-1.0 / 360.0 + zi2 * (1.0 / 1260.0)))


def _nb_loss_kernel(mu_ref, theta_ref, y_ref, out_ref, acc_ref, *,
                    eps, tm, steps, total, mask_tail):
    c = pl.program_id(0)
    s = pl.program_id(1)

    @pl.when(s == 0)
    def _():
        acc_ref[...] = jnp.zeros_like(acc_ref)

    eps_f = jnp.float32(eps)
    n_sub = tm // 8
    unroll = 2 if n_sub % 2 == 0 else 1

    if mask_tail:
        # Flat element index of each (sublane, lane) slot within one vreg tile.
        # Hoisted out of the loop (broadcast_in_dim is not CSE'd by JAX).
        vreg_iota = (jax.lax.broadcasted_iota(jnp.int32, (8, _LANES), 0) * _LANES
                     + jax.lax.broadcasted_iota(jnp.int32, (8, _LANES), 1))
        block_base = (c * steps + s) * (tm * _LANES)

    def body(i, acc):
        off = pl.multiple_of(i * 8, 8)
        mu = mu_ref[pl.ds(off, 8), :].astype(jnp.float32)
        theta = theta_ref[pl.ds(off, 8), :].astype(jnp.float32)
        y = y_ref[pl.ds(off, 8), :].astype(jnp.float32)

        te = theta + eps_f          # theta + eps
        me = mu + eps_f             # mu + eps
        tme = te + mu               # theta + mu + eps
        yp1 = y + 1.0
        yte = y + te                # y + theta + eps

        # ---- t1 = lgamma(te) + lgamma(yp1) - lgamma(yte)   (Stirling, shift 6)
        # Merged shift logs: 2 logs of grouped ratio-products.  The (<=1) ratio
        # is formed first so no intermediate exceeds a single 3-factor product.
        r_lo = (_p_lo(te) / _p_lo(yte)) * _p_lo(yp1)
        r_hi = (_p_hi(te) / _p_hi(yte)) * _p_hi(yp1)
        z1 = te + _SHIFT
        z2 = yp1 + _SHIFT
        z3 = yte + _SHIFT
        main = ((z1 - 0.5) * jnp.log(z1) + (z2 - 0.5) * jnp.log(z2)
                - (z3 - 0.5) * jnp.log(z3))
        tail = _stirling_tail(z1) + _stirling_tail(z2) - _stirling_tail(z3)
        # (-z1 - z2 + z3) == -(SHIFT + 1); one +0.5*log(2*pi) survives (+,+,-).
        t1 = (main + tail + (_HALF_LOG_2PI - (_SHIFT + 1.0))
              - jnp.log(r_lo) - jnp.log(r_hi))

        # ---- t2 = (theta+y)*log(1 + mu/te) + y*(log te - log me)
        #         = theta*log(tme/te) + y*log(tme/me)        (2 logs, was 3)
        t2 = theta * jnp.log(tme / te) + y * jnp.log(tme / me)

        final = t1 + t2
        final = jnp.where(jnp.isnan(final), jnp.float32(jnp.inf), final)  # _nan2inf
        if mask_tail:
            idx = block_base + off * _LANES + vreg_iota
            final = jnp.where(idx < total, final, jnp.float32(0.0))
        return acc + final

    acc = jax.lax.fori_loop(0, n_sub, body,
                            jnp.zeros((8, _LANES), jnp.float32), unroll=unroll)
    acc_ref[...] += acc

    @pl.when(s == pl.num_programs(1) - 1)
    def _():
        out_ref[...] = acc_ref[...]


def _default_num_chunks():
    # 2 TensorCores per chip only on v7x-class parts; 1 on v5e/v6e.
    try:
        kind = jax.devices()[0].device_kind.lower()
    except Exception:
        return 1
    return 2 if ("v7" in kind or "7x" in kind) else 1


@functools.partial(jax.jit, static_argnames=("eps", "tm", "num_chunks"))
def nb_loss(yhat, y, eps=1e-8, *, tm=1024, num_chunks=None):
    """Pallas NBLoss forward: torch.mean(nb_nll(yhat, y))."""
    n, two_d = yhat.shape
    d = two_d // 2
    assert y.shape == (n, d)
    assert tm % 8 == 0

    if num_chunks is None:
        num_chunks = _default_num_chunks()

    # Keep storage dtype through HBM/DMA when it's already a 32/16-bit float;
    # everything is upcast to f32 per-vreg inside the kernel.
    def as_kernel_dtype(v):
        if v.dtype in (jnp.float32, jnp.bfloat16):
            return v
        return v.astype(jnp.float32)

    mu = as_kernel_dtype(yhat[:, :d]).reshape(-1)
    theta = as_kernel_dtype(yhat[:, d:]).reshape(-1)
    yf = as_kernel_dtype(y).reshape(-1)

    total = n * d
    rows = -(-total // _LANES)
    # Split rows across chunks (v7x megacore) only if there is enough work.
    chunks = num_chunks if rows >= num_chunks * 8 else 1
    rpc = -(-rows // chunks)                       # rows per chunk (pre-round)
    tm_eff = min(tm, -(-rpc // 8) * 8)             # block rows, multiple of 8
    rpc = -(-rpc // tm_eff) * tm_eff               # round up to whole blocks
    steps = rpc // tm_eff
    rows_pad = rpc * chunks
    total_pad = rows_pad * _LANES
    pad = total_pad - total

    def prep(v):
        if pad:
            v = jnp.pad(v, (0, pad))               # fuses with the slice under jit
        return v.reshape(rows_pad, _LANES)

    mu2, theta2, y2 = prep(mu), prep(theta), prep(yf)

    kernel = functools.partial(
        _nb_loss_kernel, eps=float(eps), tm=tm_eff, steps=steps,
        total=total, mask_tail=pad > 0)
    in_map = lambda c, s: (c * steps + s, 0)

    out = pl.pallas_call(
        kernel,
        out_shape=jax.ShapeDtypeStruct((chunks * 8, _LANES), jnp.float32),
        grid_spec=pltpu.PrefetchScalarGridSpec(
            num_scalar_prefetch=0,
            grid=(chunks, steps),
            in_specs=[
                pl.BlockSpec((tm_eff, _LANES), in_map),
                pl.BlockSpec((tm_eff, _LANES), in_map),
                pl.BlockSpec((tm_eff, _LANES), in_map),
            ],
            out_specs=pl.BlockSpec((8, _LANES), lambda c, s: (c, 0)),
            scratch_shapes=[pltpu.VMEM((8, _LANES), jnp.float32)],
        ),
        compiler_params=pltpu.CompilerParams(
            dimension_semantics=("parallel", "arbitrary"),
        ),
    )(mu2, theta2, y2)

    # Tiny final cross-lane reduce + mean over the *real* element count.
    # TODO(synk): fold this reduce into the kernel's final pl.when (SMEM scalar
    # output) to drop the extra XLA dispatch for latency-critical paths.
    return jnp.sum(out) / jnp.float32(total)


def _nb_loss_ref(yhat, y, eps=1e-8):
    """Pure-JAX reference (mirrors the PyTorch module)."""
    d = yhat.shape[1] // 2
    mu = yhat[:, :d]
    theta = yhat[:, d:]
    lg = jax.scipy.special.gammaln
    t1 = lg(theta + eps) + lg(y + 1.0) - lg(y + theta + eps)
    t2 = (theta + y) * jnp.log(1.0 + mu / (theta + eps)) + y * (
        jnp.log(theta + eps) - jnp.log(mu + eps)
    )
    final = t1 + t2
    final = jnp.where(jnp.isnan(final), jnp.inf, final)
    return jnp.mean(final)


if __name__ == "__main__":
    key = jax.random.PRNGKey(0)
    N, D = 16, 32
    k1, k2, k3 = jax.random.split(key, 3)

    # yhat: columns 0:D are positive means, columns D:2D are positive dispersions
    mu = jax.random.uniform(k1, (N, D), jnp.float32, minval=0.1, maxval=5.0)
    theta = jax.random.uniform(k2, (N, D), jnp.float32, minval=0.5, maxval=3.0)
    yhat = jnp.concatenate([mu, theta], axis=1)  # (N, 2D)
    y = jax.random.poisson(k3, 3.0, (N, D)).astype(jnp.float32)  # counts

    loss = jax.block_until_ready(nb_loss(yhat, y))
    ref = jax.block_until_ready(_nb_loss_ref(yhat, y))

    assert jnp.isfinite(loss), f"non-finite loss: {loss}"
    assert jnp.allclose(loss, ref, rtol=1e-3, atol=1e-3), (loss, ref)
    print("KERNEL_OK")
</pallas_src>

<mosaic_0001>
module attributes {stable_mosaic.version = 11 : i64} {
  func.func @_nb_loss_kernel(%arg0: i32, %arg1: i32, %arg2: memref<8x128xf32, #tpu.memory_space<vmem>>, %arg3: memref<8x128xf32, #tpu.memory_space<vmem>>, %arg4: memref<8x128xf32, #tpu.memory_space<vmem>>, %arg5: memref<8x128xf32, #tpu.memory_space<vmem>>, %arg6: memref<8x128xf32, #tpu.memory_space<vmem>>) attributes {dimension_semantics = [#tpu.dimension_semantics<parallel>, #tpu.dimension_semantics<arbitrary>], iteration_bounds = array<i64: 1, 1>, scalar_prefetch = 0 : i64, scratch_operands = 1 : i64, tpu.core_type = #tpu.core_type<tc>, window_params = [{transform_indices = @transform_0, window_bounds = array<i64: 8, 128>}, {transform_indices = @transform_1, window_bounds = array<i64: 8, 128>}, {transform_indices = @transform_2, window_bounds = array<i64: 8, 128>}, {transform_indices = @transform_3, window_bounds = array<i64: 8, 128>}]} {
    %c0_i32 = arith.constant 0 : i32
    %0 = arith.cmpi eq, %arg1, %c0_i32 : i32
    %1 = arith.extui %0 : i1 to i32
    %c0_i32_0 = arith.constant 0 : i32
    %2 = arith.cmpi ne, %1, %c0_i32_0 : i32
    scf.if %2 {
      %cst_47 = arith.constant 0.000000e+00 : f32
      %159 = vector.broadcast %cst_47 : f32 to vector<8x128xf32>
      %c0_48 = arith.constant 0 : index
      %c0_49 = arith.constant 0 : index
      %160 = vector.load %arg6[%c0_48, %c0_49] : memref<8x128xf32, #tpu.memory_space<vmem>>, vector<8x128xf32>
      tpu.vector_store %arg6[%c0_48, %c0_49], %159 {strides = array<i32>} : memref<8x128xf32, #tpu.memory_space<vmem>>, vector<8x128xf32>,
    } else {
    }
    %3 = tpu.iota {dimensions = array<i32: 0>} : vector<8x128xi32>
    %c128_i32 = arith.constant 128 : i32
    %4 = vector.broadcast %c128_i32 : i32 to vector<8x128xi32>
    %5 = arith.muli %3, %4 : vector<8x128xi32>
    %6 = tpu.iota {dimensions = array<i32: 1>} : vector<8x128xi32>
    %7 = arith.addi %5, %6 : vector<8x128xi32>
    %c1_i32 = arith.constant 1 : i32
    %8 = arith.muli %arg0, %c1_i32 : i32
    %9 = arith.addi %8, %arg1 : i32
    %c1024_i32 = arith.constant 1024 : i32
    %10 = arith.muli %9, %c1024_i32 : i32
    %cst = arith.constant 0.000000e+00 : f32
    %11 = vector.broadcast %cst : f32 to vector<8x128xf32>
    %cst_1 = arith.constant 9.99999993E-9 : f32
    %c0_i32_2 = arith.constant 0 : i32
    %c8_i32 = arith.constant 8 : i32
    %12 = arith.muli %c0_i32_2, %c8_i32 : i32
    %13 = tpu.assume_multiple %12, 8 : i32
    %14 = arith.index_cast %13 : i32 to index
    %c0 = arith.constant 0 : index
    %15 = vector.load %arg2[%14, %c0] : memref<8x128xf32, #tpu.memory_space<vmem>>, vector<8x128xf32>
    %16 = arith.index_cast %13 : i32 to index
    %c0_3 = arith.constant 0 : index
    %17 = vector.load %arg3[%16, %c0_3] : memref<8x128xf32, #tpu.memory_space<vmem>>, vector<8x128xf32>
    %18 = arith.index_cast %13 : i32 to index
    %c0_4 = arith.constant 0 : index
    %19 = vector.load %arg4[%18, %c0_4] : memref<8x128xf32, #tpu.memory_space<vmem>>, vector<8x128xf32>
    %20 = vector.broadcast %cst_1 : f32 to vector<8x128xf32>
    %21 = arith.addf %17, %20 : vector<8x128xf32>
    %22 = vector.broadcast %cst_1 : f32 to vector<8x128xf32>
    %23 = arith.addf %15, %22 : vector<8x128xf32>
    %24 = arith.addf %21, %15 : vector<8x128xf32>
    %cst_5 = arith.constant 1.000000e+00 : f32
    %25 = vector.broadcast %cst_5 : f32 to vector<8x128xf32>
    %26 = arith.addf %19, %25 : vector<8x128xf32>
    %27 = arith.addf %19, %21 : vector<8x128xf32>
    %cst_6 = arith.constant 1.000000e+00 : f32
    %28 = vector.broadcast %cst_6 : f32 to vector<8x128xf32>
    %29 = arith.addf %21, %28 : vector<8x128xf32>
    %30 = arith.mulf %21, %29 : vector<8x128xf32>
    %cst_7 = arith.constant 2.000000e+00 : f32
    %31 = vector.broadcast %cst_7 : f32 to vector<8x128xf32>
    %32 = arith.addf %21, %31 : vector<8x128xf32>
    %33 = arith.mulf %30, %32 : vector<8x128xf32>
    %cst_8 = arith.constant 1.000000e+00 : f32
    %34 = vector.broadcast %cst_8 : f32 to vector<8x128xf32>
    %35 = arith.addf %27, %34 : vector<8x128xf32>
    %36 = arith.mulf %27, %35 : vector<8x128xf32>
    %cst_9 = arith.constant 2.000000e+00 : f32
    %37 = vector.broadcast %cst_9 : f32 to vector<8x128xf32>
    %38 = arith.addf %27, %37 : vector<8x128xf32>
    %39 = arith.mulf %36, %38 : vector<8x128xf32>
    %40 = arith.divf %33, %39 : vector<8x128xf32>
    %cst_10 = arith.constant 1.000000e+00 : f32
    %41 = vector.broadcast %cst_10 : f32 to vector<8x128xf32>
    %42 = arith.addf %26, %41 : vector<8x128xf32>
    %43 = arith.mulf %26, %42 : vector<8x128xf32>
    %cst_11 = arith.constant 2.000000e+00 : f32
    %44 = vector.broadcast %cst_11 : f32 to vector<8x128xf32>
    %45 = arith.addf %26, %44 : vector<8x128xf32>
    %46 = arith.mulf %43, %45 : vector<8x128xf32>
    %47 = arith.mulf %40, %46 : vector<8x128xf32>
    %cst_12 = arith.constant 3.000000e+00 : f32
    %48 = vector.broadcast %cst_12 : f32 to vector<8x128xf32>
    %49 = arith.addf %21, %48 : vector<8x128xf32>
    %cst_13 = arith.constant 4.000000e+00 : f32
    %50 = vector.broadcast %cst_13 : f32 to vector<8x128xf32>
    %51 = arith.addf %21, %50 : vector<8x128xf32>
    %52 = arith.mulf %49, %51 : vector<8x128xf32>
    %cst_14 = arith.constant 5.000000e+00 : f32
    %53 = vector.broadcast %cst_14 : f32 to vector<8x128xf32>
    %54 = arith.addf %21, %53 : vector<8x128xf32>
    %55 = arith.mulf %52, %54 : vector<8x128xf32>
    %cst_15 = arith.constant 3.000000e+00 : f32
    %56 = vector.broadcast %cst_15 : f32 to vector<8x128xf32>
    %57 = arith.addf %27, %56 : vector<8x128xf32>
    %cst_16 = arith.constant 4.000000e+00 : f32
    %58 = vector.broadcast %cst_16 : f32 to vector<8x128xf32>
    %59 = arith.addf %27, %58 : vector<8x128xf32>
    %60 = arith.mulf %57, %59 : vector<8x128xf32>
    %cst_17 = arith.constant 5.000000e+00 : f32
    %61 = vector.broadcast %cst_17 : f32 to vector<8x128xf32>
    %62 = arith.addf %27, %61 : vector<8x128xf32>
    %63 = arith.mulf %60, %62 : vector<8x128xf32>
    %64 = arith.divf %55, %63 : vector<8x128xf32>
    %cst_18 = arith.constant 3.000000e+00 : f32
    %65 = vector.broadcast %cst_18 : f32 to vector<8x128xf32>
    %66 = arith.addf %26, %65 : vector<8x128xf32>
    %cst_19 = arith.constant 4.000000e+00 : f32
    %67 = vector.broadcast %cst_19 : f32 to vector<8x128xf32>
    %68 = arith.addf %26, %67 : vector<8x128xf32>
    %69 = arith.mulf %66, %68 : vector<8x128xf32>
    %cst_20 = arith.constant 5.000000e+00 : f32
    %70 = vector.broadcast %cst_20 : f32 to vector<8x128xf32>
    %71 = arith.addf %26, %70 : vector<8x128xf32>
    %72 = arith.mulf %69, %71 : vector<8x128xf32>
    %73 = arith.mulf %64, %72 : vector<8x128xf32>
    %cst_21 = arith.constant 6.000000e+00 : f32
    %74 = vector.broadcast %cst_21 : f32 to vector<8x128xf32>
    %75 = arith.addf %21, %74 : vector<8x128xf32>
    %cst_22 = arith.constant 6.000000e+00 : f32
    %76 = vector.broadcast %cst_22 : f32 to vector<8x128xf32>
    %77 = arith.addf %26, %76 : vector<8x128xf32>
    %cst_23 = arith.constant 6.000000e+00 : f32
    %78 = vector.broadcast %cst_23 : f32 to vector<8x128xf32>
    %79 = arith.addf %27, %78 : vector<8x128xf32>
    %cst_24 = arith.constant 5.000000e-01 : f32
    %80 = vector.broadcast %cst_24 : f32 to vector<8x128xf32>
    %81 = arith.subf %75, %80 : vector<8x128xf32>
    %82 = math.log %75 : vector<8x128xf32>
    %83 = arith.mulf %81, %82 : vector<8x128xf32>
    %cst_25 = arith.constant 5.000000e-01 : f32
    %84 = vector.broadcast %cst_25 : f32 to vector<8x128xf32>
    %85 = arith.subf %77, %84 : vector<8x128xf32>
    %86 = math.log %77 : vector<8x128xf32>
    %87 = arith.mulf %85, %86 : vector<8x128xf32>
    %88 = arith.addf %83, %87 : vector<8x128xf32>
    %cst_26 = arith.constant 5.000000e-01 : f32
    %89 = vector.broadcast %cst_26 : f32 to vector<8x128xf32>
    %90 = arith.subf %79, %89 : vector<8x128xf32>
    %91 = math.log %79 : vector<8x128xf32>
    %92 = arith.mulf %90, %91 : vector<8x128xf32>
    %93 = arith.subf %88, %92 : vector<8x128xf32>
    %94 = tpu.reciprocal %75 {approx = true} : vector<8x128xf32> -> vector<8x128xf32>
    %95 = arith.mulf %94, %94 : vector<8x128xf32>
    %cst_27 = arith.constant 7.93650805E-4 : f32
    %96 = vector.broadcast %cst_27 : f32 to vector<8x128xf32>
    %97 = arith.mulf %95, %96 : vector<8x128xf32>
    %cst_28 = arith.constant -0.00277777785 : f32
    %98 = vector.broadcast %cst_28 : f32 to vector<8x128xf32>
    %99 = arith.addf %98, %97 : vector<8x128xf32>
    %100 = arith.mulf %95, %99 : vector<8x128xf32>
    %cst_29 = arith.constant 0.0833333358 : f32
    %101 = vector.broadcast %cst_29 : f32 to vector<8x128xf32>
    %102 = arith.addf %101, %100 : vector<8x128xf32>
    %103 = arith.mulf %94, %102 : vector<8x128xf32>
    %104 = tpu.reciprocal %77 {approx = true} : vector<8x128xf32> -> vector<8x128xf32>
    %105 = arith.mulf %104, %104 : vector<8x128xf32>
    %cst_30 = arith.constant 7.93650805E-4 : f32
    %106 = vector.broadcast %cst_30 : f32 to vector<8x128xf32>
    %107 = arith.mulf %105, %106 : vector<8x128xf32>
    %cst_31 = arith.constant -0.00277777785 : f32
    %108 = vector.broadcast %cst_31 : f32 to vector<8x128xf32>
    %109 = arith.addf %108, %107 : vector<8x128xf32>
    %110 = arith.mulf %105, %109 : vector<8x128xf32>
    %cst_32 = arith.constant 0.0833333358 : f32
    %111 = vector.broadcast %cst_32 : f32 to vector<8x128xf32>
    %112 = arith.addf %111, %110 : vector<8x128xf32>
    %113 = arith.mulf %104, %112 : vector<8x128xf32>
    %114 = arith.addf %103, %113 : vector<8x128xf32>
    %115 = tpu.reciprocal %79 {approx = true} : vector<8x128xf32> -> vector<8x128xf32>
    %116 = arith.mulf %115, %115 : vector<8x128xf32>
    %cst_33 = arith.constant 7.93650805E-4 : f32
    %117 = vector.broadcast %cst_33 : f32 to vector<8x128xf32>
    %118 = arith.mulf %116, %117 : vector<8x128xf32>
    %cst_34 = arith.constant -0.00277777785 : f32
    %119 = vector.broadcast %cst_34 : f32 to vector<8x128xf32>
    %120 = arith.addf %119, %118 : vector<8x128xf32>
    %121 = arith.mulf %116, %120 : vector<8x128xf32>
    %cst_35 = arith.constant 0.0833333358 : f32
    %122 = vector.broadcast %cst_35 : f32 to vector<8x128xf32>
    %123 = arith.addf %122, %121 : vector<8x128xf32>
    %124 = arith.mulf %115, %123 : vector<8x128xf32>
    %125 = arith.subf %114, %124 : vector<8x128xf32>
    %126 = arith.addf %93, %125 : vector<8x128xf32>
    %cst_36 = arith.constant -6.08106136 : f32
    %127 = vector.broadcast %cst_36 : f32 to vector<8x128xf32>
    %128 = arith.addf %126, %127 : vector<8x128xf32>
    %129 = math.log %47 : vector<8x128xf32>
    %130 = arith.subf %128, %129 : vector<8x128xf32>
    %131 = math.log %73 : vector<8x128xf32>
    %132 = arith.subf %130, %131 : vector<8x128xf32>
    %133 = arith.divf %24, %21 : vector<8x128xf32>
    %134 = math.log %133 : vector<8x128xf32>
    %135 = arith.mulf %17, %134 : vector<8x128xf32>
    %136 = arith.divf %24, %23 : vector<8x128xf32>
    %137 = math.log %136 : vector<8x128xf32>
    %138 = arith.mulf %19, %137 : vector<8x128xf32>
    %139 = arith.addf %135, %138 : vector<8x128xf32>
    %140 = arith.addf %132, %139 : vector<8x128xf32>
    %141 = arith.cmpf one, %140, %140 : vector<8x128xf32>
    %cst_37 = arith.constant 0x7F800000 : f32
    %142 = vector.broadcast %cst_37 : f32 to vector<8x128xf32>
    %143 = arith.select %141, %142, %140 : vector<8x128xi1>, vector<8x128xf32>
    %c128_i32_38 = arith.constant 128 : i32
    %144 = arith.muli %13, %c128_i32_38 : i32
    %145 = arith.addi %10, %144 : i32
    %146 = vector.broadcast %145 : i32 to vector<8x128xi32>
    %147 = arith.addi %146, %7 : vector<8x128xi32>
    %c512_i32 = arith.constant 512 : i32
    %148 = vector.broadcast %c512_i32 : i32 to vector<8x128xi32>
    %149 = arith.cmpi slt, %147, %148 : vector<8x128xi32>
    %cst_39 = arith.constant 0.000000e+00 : f32
    %150 = vector.broadcast %cst_39 : f32 to vector<8x128xf32>
    %151 = arith.select %149, %143, %150 : vector<8x128xi1>, vector<8x128xf32>
    %152 = arith.addf %11, %151 : vector<8x128xf32>
    %c1_i32_40 = arith.constant 1 : i32
    %c0_41 = arith.constant 0 : index
    %c0_42 = arith.constant 0 : index
    %153 = vector.load %arg6[%c0_41, %c0_42] : memref<8x128xf32, #tpu.memory_space<vmem>>, vector<8x128xf32>
    %154 = arith.addf %153, %152 : vector<8x128xf32>
    %c0_43 = arith.constant 0 : index
    %c0_44 = arith.constant 0 : index
    %155 = vector.load %arg6[%c0_43, %c0_44] : memref<8x128xf32, #tpu.memory_space<vmem>>, vector<8x128xf32>
    tpu.vector_store %arg6[%c0_43, %c0_44], %154 {strides = array<i32>} : memref<8x128xf32, #tpu.memory_space<vmem>>, vector<8x128xf32>,
    %c0_i32_45 = arith.constant 0 : i32
    %156 = arith.cmpi eq, %arg1, %c0_i32_45 : i32
    %157 = arith.extui %156 : i1 to i32
    %c0_i32_46 = arith.constant 0 : i32
    %158 = arith.cmpi ne, %157, %c0_i32_46 : i32
    scf.if %158 {
      %c0_47 = arith.constant 0 : index
      %c0_48 = arith.constant 0 : index
      %159 = vector.load %arg6[%c0_47, %c0_48] : memref<8x128xf32, #tpu.memory_space<vmem>>, vector<8x128xf32>
      %c0_49 = arith.constant 0 : index
      %c0_50 = arith.constant 0 : index
      %160 = vector.load %arg5[%c0_49, %c0_50] : memref<8x128xf32, #tpu.memory_space<vmem>>, vector<8x128xf32>
      tpu.vector_store %arg5[%c0_49, %c0_50], %159 {strides = array<i32>} : memref<8x128xf32, #tpu.memory_space<vmem>>, vector<8x128xf32>,
    } else {
    }
    return
  }
  func.func @transform_0(%arg0: i32, %arg1: i32) -> (i32, i32) {
    %c1_i32 = arith.constant 1 : i32
    %0 = arith.muli %arg0, %c1_i32 : i32
    %1 = arith.addi %0, %arg1 : i32
    %c0_i32 = arith.constant 0 : i32
    %c0_i32_0 = arith.constant 0 : i32
    return %1, %c0_i32 : i32, i32
  }
  func.func @transform_1(%arg0: i32, %arg1: i32) -> (i32, i32) {
    %c1_i32 = arith.constant 1 : i32
    %0 = arith.muli %arg0, %c1_i32 : i32
    %1 = arith.addi %0, %arg1 : i32
    %c0_i32 = arith.constant 0 : i32
    %c0_i32_0 = arith.constant 0 : i32
    return %1, %c0_i32 : i32, i32
  }
  func.func @transform_2(%arg0: i32, %arg1: i32) -> (i32, i32) {
    %c1_i32 = arith.constant 1 : i32
    %0 = arith.muli %arg0, %c1_i32 : i32
    %1 = arith.addi %0, %arg1 : i32
    %c0_i32 = arith.constant 0 : i32
    %c0_i32_0 = arith.constant 0 : i32
    return %1, %c0_i32 : i32, i32
  }
  func.func @transform_3(%arg0: i32, %arg1: i32) -> (i32, i32) {
    %c0_i32 = arith.constant 0 : i32
    %c0_i32_0 = arith.constant 0 : i32
    return %arg0, %c0_i32 : i32, i32
  }
}

</mosaic_0001>

<bundles_post_ra>
// kernel: nb_loss.1
= control target key start
LH: loop header
LB: loop body
LE: loop exit
PB: predicated region body
PF: predicated region fallthrough
CT: control target
= control target key end

     0   :  { %s432_s1 = inlined_call_operand.vmem [shape: f32[8,128], index: 1, kind: input, shape index: {}]   ;;  %s433_s2 = inlined_call_operand.vmem [shape: f32[8,128], index: 2, kind: input, shape index: {}]   ;;  %s434_s0 = inlined_call_operand.vmem [shape: f32[8,128], index: 0, kind: input, shape index: {}]   ;;  %s435_s3 = inlined_call_operand.vmem [shape: f32[8,128], index: 3, kind: output, shape index: {}]  }
   0x1   :  { %v324_v0 = vld [vmem:[%s432_s1] sm:$0xff] }
   0x2   :  { %v329_v1 = vld [vmem:[%s433_s2] sm:$0xff]  ;;  %v332_v2 = vadd.f32 1e-08, %v324_v0 }
   0x3   :  { %v84_v4 = vadd.f32 1.0, %v329_v1  ;;  %v78_v22 = vld [vmem:[%s434_s0] sm:$0xff] }
   0x4   :  { %v85_v3 = vadd.f32 %v332_v2, %v329_v1  ;;  %v86_v5 = vadd.f32 1.0, %v332_v2  ;;  %v114_v9 = vadd.f32 3.0, %v332_v2  ;;  %v115_v10 = vadd.f32 4.0, %v332_v2 }
   0x5   :  { %v109_v8 = vadd.f32 1.0, %v84_v4  ;;  %v88_v14 = vadd.f32 2.0, %v332_v2  ;;  %v139_v16 = vadd.f32 3.0, %v84_v4  ;;  %v140_v17 = vadd.f32 4.0, %v84_v4 }
   0x6   :  { %v90_v6 = vadd.f32 1.0, %v85_v3  ;;  %v92_v7 = vadd.f32 2.0, %v85_v3  ;;  %v119_v11 = vadd.f32 3.0, %v85_v3  ;;  %v120_v13 = vadd.f32 4.0, %v85_v3 }
   0x7   :  { %v122_v15 = vadd.f32 5.0, %v85_v3  ;;  %v87_v18 = vmul.f32 %v86_v5, %v332_v2  ;;  %v111_v20 = vadd.f32 2.0, %v84_v4  ;;  %v110_v23 = vmul.f32 %v109_v8, %v84_v4 }
   0x8   :  { %v91_v12 = vmul.f32 %v90_v6, %v85_v3  ;;  %v121_v21 = vmul.f32 %v120_v13, %v119_v11  ;;  %v116_v24 = vmul.f32 %v115_v10, %v114_v9  ;;  %v117_v25 = vadd.f32 5.0, %v332_v2 }
   0x9   :  { %v145_v26 = vadd.f32 6.0, %v332_v2  ;;  %v141_v27 = vmul.f32 %v140_v17, %v139_v16  ;;  %v142_v28 = vadd.f32 5.0, %v84_v4  ;;  %v146_v29 = vadd.f32 6.0, %v84_v4 }
   0xa   :  { %v93_v19 = vmul.f32 %v92_v7, %v91_v12  ;;  %v347_v32 = vmul.f32 %v122_v15, %v121_v21  ;;  %v349_v33 = vadd.f32 1e-08, %v78_v22  ;;  %v147_v34 = vadd.f32 6.0, %v85_v3 }
   0xb   :  { %v352_v35 = vadd.f32 %v332_v2, %v78_v22  ;;  %v354_v36 = vmul.f32 %v88_v14, %v87_v18  ;;  %v356_v37 = vmul.f32 %v111_v20, %v110_v23  ;;  %v359_v38 = vmul.f32 %v117_v25, %v116_v24 }
   0xc   :  { %273 = vrcp.f32 %v93_v19  ;;  %v103_v30 = vand.u32 2147483647, %v93_v19  ;;  %v105_v31 = vand.u32 2147483648, %v93_v19  ;;  %vm99_vm0 = vweird.f32 %v93_v19 }
   0xd   :  { %275 = vlog2.f32 %v145_v26  ;;  %v361_v39 = vmul.f32 %v142_v28, %v141_v27  ;;  %v270_v42 = vadd.f32 -0.5, %v145_v26  ;;  %vm129_vm2 = vweird.f32 %v347_v32 }
   0xe   :  { %277 = vlog2.f32 %v146_v29  ;;  %vm363_vm1 = vcmp.eq.f32.partialorder %v103_v30, 8.507059e+37  ;;  %v106_v41 = vor.u32 1.1754944e-38, %v105_v31  ;;  %v133_v44 = vand.u32 2147483647, %v347_v32 }
   0xf   :  { %279 = vrcp.f32 %v347_v32  ;;  %v271_v45 = vadd.f32 -0.5, %v146_v29  ;;  %v135_v48 = vand.u32 2147483648, %v347_v32  ;;  %v272_v49 = vadd.f32 -0.5, %v147_v34 }
  0x10   :  { %281 = vlog2.f32 %v147_v34  ;;  %v202_v52 = vand.u32 2147483647, %v332_v2  ;;  %v204_v53 = vand.u32 2147483648, %v332_v2  ;;  %vm375_vm4 = vcmp.eq.f32.partialorder %v133_v44, 8.507059e+37 }
  0x11   :  { %283 = vrcp.f32 %v145_v26  ;;  %vm198_vm5 = vweird.f32 %v332_v2  ;;  %v136_v63 = vor.u32 1.1754944e-38, %v135_v48  ;;  %vm216_vm8 = vweird.f32 %v349_v33 }
  0x12   :  { %v274_v43 = vpop.eup %273  ;;  %285 = vrcp.f32 %v146_v29  ;;  %v220_v9 = vand.u32 2147483647, %v349_v33  ;;  %vm387_vm9 = vcmp.eq.f32.partialorder %v202_v52, 8.507059e+37  ;;  %v205_v14 = vor.u32 1.1754944e-38, %v204_v53 }
  0x13   :  { %v276_v46 = vpop.eup %275  ;;  %v95_v47 = vmul.f32 %v274_v43, %v93_v19  ;;  %287 = vrcp.f32 %v147_v34  ;;  %vm100_vm3 = vweird.f32 %v274_v43  ;;  %v222_v15 = vand.u32 2147483648, %v349_v33 }
  0x14   :  { %v278_v50 = vpop.eup %277  ;;  %v150_v51 = vmul.f32 0.6931472, %v276_v46  ;;  %289 = vrcp.f32 %v332_v2  ;;  %vm381_vm6 = vmor %vm99_vm0, %vm100_vm3  ;;  %vm221_vm15 = vcmp.eq.f32.partialorder %v220_v9, 8.507059e+37  ;;  %v70_v6 = vlaneseq }
  0x15   :  { %v280_v54 = vpop.eup %279  ;;  %v96_v55 = vsub.f32 1.0, %v95_v47  ;;  %v154_v56 = vmul.f32 0.6931472, %v278_v50  ;;  %291 = vrcp.f32 %v349_v33 }
  0x16   :  { %v282_v57 = vpop.eup %281  ;;  %v125_v58 = vmul.f32 %v280_v54, %v347_v32  ;;  %v151_v60 = vmul.f32 %v270_v42, %v150_v51  ;;  %vm130_vm7 = vweird.f32 %v280_v54 }
  0x17   :  { %v284_v61 = vpop.eup %283  ;;  %v97_v62 = vmul.f32 %v274_v43, %v96_v55  ;;  %v155_v3 = vmul.f32 %v271_v45, %v154_v56  ;;  %v159_v4 = vmul.f32 0.6931472, %v282_v57  ;;  %vm397_vm10 = vmor %vm129_vm2, %vm130_vm7 }
  0x18   :  { %v286_v5 = vpop.eup %285  ;;  %v126_v7 = vsub.f32 1.0, %v125_v58  ;;  %v163_v8 = vmul.f32 %v284_v61, %v284_v61 }
  0x19   :  { %v288_v10 = vpop.eup %287  ;;  %v98_v11 = vadd.f32 %v274_v43, %v97_v62  ;;  %v170_v12 = vmul.f32 %v286_v5, %v286_v5  ;;  %v156_v18 = vadd.f32 %v155_v3, %v151_v60  ;;  %v160_v24 = vmul.f32 %v272_v49, %v159_v4 }
  0x1a   :  { %v290_v16 = vpop.eup %289  ;;  %v127_v17 = vmul.f32 %v280_v54, %v126_v7  ;;  %v164_v19 = vmul.f32 0.0007936508, %v163_v8  ;;  %v178_v20 = vmul.f32 %v288_v10, %v288_v10 }
  0x1b   :  { %v292_v21 = vpop.eup %291  ;;  %v102_v22 = vsel %vm381_vm6, %v274_v43, %v98_v11  ;;  %v171_v25 = vmul.f32 0.0007936508, %v170_v12  ;;  %v194_v26 = vmul.f32 %v290_v16, %v332_v2  ;;  %vm199_vm11 = vweird.f32 %v290_v16 }
  0x1c   :  { %v107_v27 = vsel %vm363_vm1, %v106_v41, %v102_v22  ;;  %v128_v28 = vadd.f32 %v280_v54, %v127_v17  ;;  %v165_v29 = vadd.f32 -0.0027777778, %v164_v19  ;;  %v179_v30 = vmul.f32 0.0007936508, %v178_v20  ;;  %vm414_vm12 = vmor %vm198_vm5, %vm199_vm11 }
  0x1d   :  { %v108_v31 = vmul.f32 %v107_v27, %v354_v36  ;;  %v172_v34 = vadd.f32 -0.0027777778, %v171_v25  ;;  %v195_v42 = vsub.f32 1.0, %v194_v26  ;;  %v212_v45 = vmul.f32 %v292_v21, %v349_v33 }
  0x1e   :  { %v132_v32 = vsel %vm397_vm10, %v280_v54, %v128_v28  ;;  %v166_v43 = vmul.f32 %v165_v29, %v163_v8  ;;  %v180_v44 = vadd.f32 -0.0027777778, %v179_v30  ;;  %vm217_vm13 = vweird.f32 %v292_v21 }
  0x1f   :  { %v113_v46 = vmul.f32 %v356_v37, %v108_v31  ;;  %v137_v40 = vsel %vm375_vm4, %v136_v63, %v132_v32  ;;  %v173_v41 = vmul.f32 %v172_v34, %v170_v12  ;;  %v196_v47 = vmul.f32 %v290_v16, %v195_v42  ;;  %vm218_vm14 = vmor %vm216_vm8, %vm217_vm13 }
  0x20   :  { %v138_v48 = vmul.f32 %v137_v40, %v359_v38  ;;  %v167_v36 = vadd.f32 0.083333336, %v166_v43  ;;  %v181_v49 = vmul.f32 %v180_v44, %v178_v20  ;;  %v213_v51 = vsub.f32 1.0, %v212_v45 }
  0x21   :  { %v174_v52 = vadd.f32 0.083333336, %v173_v41  ;;  %293 = vlog2.f32 %v113_v46  ;;  %v197_v53 = vadd.f32 %v290_v16, %v196_v47  ;;  %v223_v2 = vor.u32 1.1754944e-38, %v222_v15 }
  0x22   :  { %v144_v37 = vmul.f32 %v361_v39, %v138_v48  ;;  %v168_v54 = vmul.f32 %v284_v61, %v167_v36  ;;  %v182_v55 = vadd.f32 0.083333336, %v181_v49  ;;  %v214_v56 = vmul.f32 %v292_v21, %v213_v51 }
  0x23   :  { %v175_v57 = vmul.f32 %v286_v5, %v174_v52  ;;  %v201_v38 = vsel %vm414_vm12, %v290_v16, %v197_v53  ;;  %v161_v62 = vsub.f32 %v156_v18, %v160_v24  ;;  %v71_v12 = vshrl.u32 %v70_v6, 7 }
  0x24   :  { %v183_v58 = vmul.f32 %v288_v10, %v182_v55  ;;  %v206_v59 = vsel %vm387_vm9, %v205_v14, %v201_v38  ;;  %v215_v60 = vadd.f32 %v292_v21, %v214_v56  ;;  %295 = vlog2.f32 %v144_v37 }
  0x25   :  { %v176_v63 = vadd.f32 %v175_v57, %v168_v54  ;;  %v207_v39 = vmul.f32 %v206_v59, %v352_v35  ;;  %v72_v17 = vmul.u32 128, %v71_v12  ;;  %v74_v18 = vand.u32 127, %v70_v6 }
  0x26   :  { %v219_v61 = vsel %vm218_vm14, %v292_v21, %v215_v60 }
  0x27   :  { %v294_v3 = vpop.eup %293  ;;  %v184_v4 = vsub.f32 %v176_v63, %v183_v58  ;;  %297 = vlog2.f32 %v207_v39  ;;  %v224_v5 = vsel %vm221_vm15, %v223_v2, %v219_v61 }
  0x28   :  { %v225_v33 = vmul.f32 %v224_v5, %v352_v35  ;;  %v188_v10 = vmul.f32 0.6931472, %v294_v3  ;;  %v75_v35 = vadd.s32 %v74_v18, %v72_v17 }
  0x29   :  { %v185_v7 = vadd.f32 %v184_v4, %v161_v62 }
  0x2a   :  { %299 = vlog2.f32 %v225_v33  ;;  %v296_v11 = vpop.eup %295  ;;  %vm237_vm0 = vcmp.lt.s32.totalorder %v75_v35, 512 }
  0x2b   :  { %v186_v8 = vadd.f32 -6.0810614, %v185_v7  ;;  %v191_v15 = vmul.f32 0.6931472, %v296_v11 }
  0x2d   :  { %v298_v9 = vpop.eup %297  ;;  %v189_v14 = vsub.f32 %v186_v8, %v188_v10 }
  0x2e   :  { %v209_v13 = vmul.f32 0.6931472, %v298_v9 }
  0x2f   :  { %v192_v21 = vsub.f32 %v189_v14, %v191_v15 }
  0x30   :  { %v300_v16 = vpop.eup %299  ;;  %v210_v19 = vmul.f32 %v209_v13, %v324_v0 }
  0x31   :  { %v227_v20 = vmul.f32 0.6931472, %v300_v16 }
  0x33   :  { %v228_v22 = vmul.f32 %v227_v20, %v329_v1 }
  0x35   :  { %v229_v23 = vadd.f32 %v228_v22, %v210_v19 }
  0x37   :  { %v230_v24 = vadd.f32 %v229_v23, %v192_v21 }
  0x39   :  { %vm231_vm1 = vcmp.ne.f32.partialorder %v230_v24, %v230_v24 }
  0x3a   :  { %v232_v25 = vsel %vm231_vm1, inf, %v230_v24 }
  0x3b   :  { %v238_v26 = vsel %vm237_vm0, %v232_v25, 0.0 }
  0x3c   :  { %247 = vst [vmem:[%s435_s3] sm:$0xff] %v238_v26 }

</bundles_post_ra>
